<compile_context>
chip_gen: v7x
topology: tpu7x:2x2x1
jax: 0.10.0
libtpu: 0.0.40
codegen_flags: <defaults>
</compile_context>

<pallas_src>
import functools

import jax
import jax.numpy as jnp
from jax.experimental import pallas as pl
from jax.experimental.pallas import tpu as pltpu


def prf_critic_kernel(x_ref, w1_ref, b1_ref, w2_ref, b2_ref, w3_ref, b3_ref,
                      out_ref, *, ensemble_size, hidden_dim):
    E, H = ensemble_size, hidden_dim
    x = x_ref[...]                                           # (tile_b, D_in)

    # Layer 1 for ALL ensemble members at once (lane-stacked weights):
    # (tile_b, D_in) @ (D_in, E*H) -> one MXU pass, Exp activation on VPU/EUP.
    z1 = jnp.dot(x, w1_ref[...], preferred_element_type=jnp.float32)
    h1 = jnp.exp(z1 + b1_ref[...])                           # (tile_b, E*H)

    cols = []
    for e in range(E):                                       # E == 2, fully unrolled
        h1_e = h1[:, e * H:(e + 1) * H]                      # (tile_b, H)

        # Layer 2: per-member (tile_b, H) @ (H, H) + bias, ELU activation.
        z2 = jnp.dot(h1_e, w2_ref[e], preferred_element_type=jnp.float32)
        z2 = z2 + b2_ref[e]                                  # (1, H) broadcast
        zneg = jnp.minimum(z2, 0.0)
        # expm1(zneg) == tanh(z/2) * (exp(z) + 1): exact identity, stable near
        # 0 (matches torch ELU's expm1) using only exp/tanh elementwise ops.
        expm1_neg = jnp.tanh(0.5 * zneg) * (jnp.exp(zneg) + 1.0)
        h2 = jnp.where(z2 > 0, z2, expm1_neg)                # (tile_b, H)

        # Layer 3 (output_dim == 1): VPU multiply + lane reduction — no N=1
        # MXU matmul, no padded (H, 1) weight tile.
        cols.append(jnp.sum(h2 * w3_ref[e], axis=-1, keepdims=True))  # (tile_b, 1)

    out = jnp.concatenate(cols, axis=-1) + b3_ref[...]       # (tile_b, E)
    out_ref[...] = out.astype(out_ref.dtype)


def prf_critic_forward(x, params, *, block_b=None):
    """x: (B, input_dim) float32 -> (E, B, 1) float32 (module output layout)."""
    w1, b1, w2, b2, w3, b3 = params                          # (E, ...) stacks
    E, D_in, H = w1.shape
    B = x.shape[0]

    # Tiny repack (fused by XLA): lane-stack the ensemble for layers 1 and 3.
    w1s = jnp.transpose(w1, (1, 0, 2)).reshape(D_in, E * H)  # (D_in, E*H)
    b1s = jnp.transpose(b1, (1, 0, 2)).reshape(1, E * H)     # (1, E*H)
    w3r = jnp.transpose(w3, (0, 2, 1))                       # (E, 1, H) weight rows
    b3r = b3.reshape(1, E)                                   # (1, E)

    # Batch tiling: one step for small B; sublane-aligned tiles (and a
    # "parallel" grid that megacore can shard) for large production batches.
    if block_b is None:
        block_b = B if B <= 1024 else 1024
    if block_b < B:
        block_b = max(8, (block_b // 8) * 8)                 # sublane-aligned tiles
    grid = (pl.cdiv(B, block_b),)

    out = pl.pallas_call(
        functools.partial(prf_critic_kernel, ensemble_size=E, hidden_dim=H),
        out_shape=jax.ShapeDtypeStruct((B, E), jnp.float32),
        grid=grid,
        in_specs=[
            pl.BlockSpec((block_b, D_in), lambda i: (i, 0)),   # x (tiled over B)
            pl.BlockSpec((D_in, E * H), lambda i: (0, 0)),     # W1 lane-stacked (resident)
            pl.BlockSpec((1, E * H), lambda i: (0, 0)),        # b1 lane-stacked
            pl.BlockSpec((E, H, H), lambda i: (0, 0, 0)),      # W2 full stack
            pl.BlockSpec((E, 1, H), lambda i: (0, 0, 0)),      # b2
            pl.BlockSpec((E, 1, H), lambda i: (0, 0, 0)),      # W3 rows
            pl.BlockSpec((1, E), lambda i: (0, 0)),            # b3
        ],
        out_specs=pl.BlockSpec((block_b, E), lambda i: (i, 0)),
        compiler_params=pltpu.CompilerParams(
            dimension_semantics=("parallel",)),
    )(x, w1s, b1s, w2, b2, w3r, b3r)

    # Restore the module's (E, B, 1) layout outside the kernel (cheap XLA op).
    return jnp.transpose(out, (1, 0))[..., None]


def init_params(key, input_dim, hidden_dim, ensemble_size=2):
    """Deterministic synthetic init (uniform fan-in scaling, like nn.Linear)."""
    ks = jax.random.split(key, 6)

    def lin(kw, kb, e, fan_in, fan_out):
        bound = 1.0 / jnp.sqrt(jnp.float32(fan_in))
        w = jax.random.uniform(kw, (e, fan_in, fan_out), jnp.float32,
                               -bound, bound)
        b = jax.random.uniform(kb, (e, 1, fan_out), jnp.float32,
                               -bound, bound)
        return w, b

    w1, b1 = lin(ks[0], ks[1], ensemble_size, input_dim, hidden_dim)
    w2, b2 = lin(ks[2], ks[3], ensemble_size, hidden_dim, hidden_dim)
    w3, b3 = lin(ks[4], ks[5], ensemble_size, hidden_dim, 1)
    return (w1, b1, w2, b2, w3, b3)


def prf_critic_ref(x, params):
    """Pure-JAX reference of EnsembleMLP(input->H->H->1) with [Exp, ELU]."""
    w1, b1, w2, b2, w3, b3 = params
    xb = jnp.broadcast_to(x[None], (w1.shape[0],) + x.shape)  # (E, B, D_in)
    h1 = jnp.exp(jnp.einsum("ebi,eio->ebo", xb, w1) + b1)
    z2 = jnp.einsum("ebi,eio->ebo", h1, w2) + b2
    h2 = jnp.where(z2 > 0, z2, jnp.expm1(jnp.minimum(z2, 0.0)))  # torch ELU
    return jnp.einsum("ebi,eio->ebo", h2, w3) + b3


if __name__ == "__main__":
    key = jax.random.PRNGKey(0)
    k_x, k_p = jax.random.split(key)

    batch = 8
    input_dim = 16
    hidden_dim = 32

    x = jax.random.normal(k_x, (batch, input_dim), jnp.float32)
    params = init_params(k_p, input_dim, hidden_dim, ensemble_size=2)

    out = prf_critic_forward(x, params)
    out = jax.block_until_ready(out)

    ref = prf_critic_ref(x, params)
    assert out.shape == (2, batch, 1), out.shape
    assert jnp.allclose(out, ref, atol=1e-4, rtol=1e-4), (
        float(jnp.max(jnp.abs(out - ref))))

    print("KERNEL_OK")
</pallas_src>

<mosaic_0001>
module attributes {stable_mosaic.version = 11 : i64} {
  func.func @prf_critic_kernel(%arg0: i32, %arg1: memref<8x16xf32, #tpu.memory_space<vmem>>, %arg2: memref<16x64xf32, #tpu.memory_space<vmem>>, %arg3: memref<1x64xf32, #tpu.memory_space<vmem>>, %arg4: memref<2x32x32xf32, #tpu.memory_space<vmem>>, %arg5: memref<2x1x32xf32, #tpu.memory_space<vmem>>, %arg6: memref<2x1x32xf32, #tpu.memory_space<vmem>>, %arg7: memref<1x2xf32, #tpu.memory_space<vmem>>, %arg8: memref<8x2xf32, #tpu.memory_space<vmem>>) attributes {dimension_semantics = [#tpu.dimension_semantics<parallel>], iteration_bounds = array<i64: 1>, scalar_prefetch = 0 : i64, scratch_operands = 0 : i64, tpu.core_type = #tpu.core_type<tc>, window_params = [{transform_indices = @transform_0, window_bounds = array<i64: 8, 16>}, {pipeline_mode = #tpu.pipeline_mode<synchronous>, transform_indices = @transform_1, window_bounds = array<i64: 16, 64>}, {pipeline_mode = #tpu.pipeline_mode<synchronous>, transform_indices = @transform_2, window_bounds = array<i64: 1, 64>}, {pipeline_mode = #tpu.pipeline_mode<synchronous>, transform_indices = @transform_3, window_bounds = array<i64: 2, 32, 32>}, {pipeline_mode = #tpu.pipeline_mode<synchronous>, transform_indices = @transform_4, window_bounds = array<i64: 2, 1, 32>}, {pipeline_mode = #tpu.pipeline_mode<synchronous>, transform_indices = @transform_5, window_bounds = array<i64: 2, 1, 32>}, {pipeline_mode = #tpu.pipeline_mode<synchronous>, transform_indices = @transform_6, window_bounds = array<i64: 1, 2>}, {transform_indices = @transform_7, window_bounds = array<i64: 8, 2>}]} {
    %c0 = arith.constant 0 : index
    %c0_0 = arith.constant 0 : index
    %0 = vector.load %arg1[%c0, %c0_0] : memref<8x16xf32, #tpu.memory_space<vmem>>, vector<8x16xf32>
    %c0_1 = arith.constant 0 : index
    %c0_2 = arith.constant 0 : index
    %1 = vector.load %arg2[%c0_1, %c0_2] : memref<16x64xf32, #tpu.memory_space<vmem>>, vector<16x64xf32>
    %cst = arith.constant dense<0.000000e+00> : vector<8x64xf32>
    %2 = tpu.matmul %0, %1, %cst {dimension_numbers = #tpu.dot_dimension_numbers<[1], [0], [0], [1], [0, 0, 1, 1], [], []>} : vector<8x16xf32>, vector<16x64xf32>, vector<8x64xf32> -> vector<8x64xf32>
    %c0_3 = arith.constant 0 : index
    %c0_4 = arith.constant 0 : index
    %3 = vector.load %arg3[%c0_3, %c0_4] : memref<1x64xf32, #tpu.memory_space<vmem>>, vector<1x64xf32>
    %4 = vector.broadcast %3 : vector<1x64xf32> to vector<8x64xf32>
    %5 = arith.addf %2, %4 : vector<8x64xf32>
    %6 = math.exp %5 : vector<8x64xf32>
    %7 = vector.extract_strided_slice %6 {offsets = [0, 0], sizes = [8, 32], strides = [1, 1]} : vector<8x64xf32> to vector<8x32xf32>
    %c0_5 = arith.constant 0 : index
    %c0_6 = arith.constant 0 : index
    %c0_7 = arith.constant 0 : index
    %8 = vector.load %arg4[%c0_5, %c0_6, %c0_7] : memref<2x32x32xf32, #tpu.memory_space<vmem>>, vector<1x32x32xf32>
    %9 = vector.shape_cast %8 : vector<1x32x32xf32> to vector<32x32xf32>
    %cst_8 = arith.constant dense<0.000000e+00> : vector<8x32xf32>
    %10 = tpu.matmul %7, %9, %cst_8 {dimension_numbers = #tpu.dot_dimension_numbers<[1], [0], [0], [1], [0, 0, 1, 1], [], []>} : vector<8x32xf32>, vector<32x32xf32>, vector<8x32xf32> -> vector<8x32xf32>
    %c0_9 = arith.constant 0 : index
    %c0_10 = arith.constant 0 : index
    %c0_11 = arith.constant 0 : index
    %11 = vector.load %arg5[%c0_9, %c0_10, %c0_11] : memref<2x1x32xf32, #tpu.memory_space<vmem>>, vector<1x1x32xf32>
    %12 = vector.shape_cast %11 : vector<1x1x32xf32> to vector<1x32xf32>
    %13 = vector.broadcast %12 : vector<1x32xf32> to vector<8x32xf32>
    %14 = arith.addf %10, %13 : vector<8x32xf32>
    %cst_12 = arith.constant 0.000000e+00 : f32
    %15 = vector.broadcast %cst_12 : f32 to vector<8x32xf32>
    %16 = arith.minimumf %14, %15 : vector<8x32xf32>
    %cst_13 = arith.constant 5.000000e-01 : f32
    %17 = vector.broadcast %cst_13 : f32 to vector<8x32xf32>
    %18 = arith.mulf %17, %16 : vector<8x32xf32>
    %19 = math.tanh %18 : vector<8x32xf32>
    %20 = math.exp %16 : vector<8x32xf32>
    %cst_14 = arith.constant 1.000000e+00 : f32
    %21 = vector.broadcast %cst_14 : f32 to vector<8x32xf32>
    %22 = arith.addf %20, %21 : vector<8x32xf32>
    %23 = arith.mulf %19, %22 : vector<8x32xf32>
    %cst_15 = arith.constant 0.000000e+00 : f32
    %24 = vector.broadcast %cst_15 : f32 to vector<8x32xf32>
    %25 = arith.cmpf ogt, %14, %24 : vector<8x32xf32>
    %26 = arith.select %25, %14, %23 : vector<8x32xi1>, vector<8x32xf32>
    %c0_16 = arith.constant 0 : index
    %c0_17 = arith.constant 0 : index
    %c0_18 = arith.constant 0 : index
    %27 = vector.load %arg6[%c0_16, %c0_17, %c0_18] : memref<2x1x32xf32, #tpu.memory_space<vmem>>, vector<1x1x32xf32>
    %28 = vector.shape_cast %27 : vector<1x1x32xf32> to vector<1x32xf32>
    %29 = vector.broadcast %28 : vector<1x32xf32> to vector<8x32xf32>
    %30 = arith.mulf %26, %29 : vector<8x32xf32>
    %cst_19 = arith.constant dense<0.000000e+00> : vector<8xf32>
    %31 = vector.multi_reduction <add>, %30, %cst_19 [1] : vector<8x32xf32> to vector<8xf32>
    %32 = vector.shape_cast %31 : vector<8xf32> to vector<8x1xf32>
    %33 = vector.extract_strided_slice %6 {offsets = [0, 32], sizes = [8, 32], strides = [1, 1]} : vector<8x64xf32> to vector<8x32xf32>
    %c1 = arith.constant 1 : index
    %c0_20 = arith.constant 0 : index
    %c0_21 = arith.constant 0 : index
    %34 = vector.load %arg4[%c1, %c0_20, %c0_21] : memref<2x32x32xf32, #tpu.memory_space<vmem>>, vector<1x32x32xf32>
    %35 = vector.shape_cast %34 : vector<1x32x32xf32> to vector<32x32xf32>
    %cst_22 = arith.constant dense<0.000000e+00> : vector<8x32xf32>
    %36 = tpu.matmul %33, %35, %cst_22 {dimension_numbers = #tpu.dot_dimension_numbers<[1], [0], [0], [1], [0, 0, 1, 1], [], []>} : vector<8x32xf32>, vector<32x32xf32>, vector<8x32xf32> -> vector<8x32xf32>
    %c1_23 = arith.constant 1 : index
    %c0_24 = arith.constant 0 : index
    %c0_25 = arith.constant 0 : index
    %37 = vector.load %arg5[%c1_23, %c0_24, %c0_25] : memref<2x1x32xf32, #tpu.memory_space<vmem>>, vector<1x1x32xf32>
    %38 = vector.shape_cast %37 : vector<1x1x32xf32> to vector<1x32xf32>
    %39 = vector.broadcast %38 : vector<1x32xf32> to vector<8x32xf32>
    %40 = arith.addf %36, %39 : vector<8x32xf32>
    %cst_26 = arith.constant 0.000000e+00 : f32
    %41 = vector.broadcast %cst_26 : f32 to vector<8x32xf32>
    %42 = arith.minimumf %40, %41 : vector<8x32xf32>
    %cst_27 = arith.constant 5.000000e-01 : f32
    %43 = vector.broadcast %cst_27 : f32 to vector<8x32xf32>
    %44 = arith.mulf %43, %42 : vector<8x32xf32>
    %45 = math.tanh %44 : vector<8x32xf32>
    %46 = math.exp %42 : vector<8x32xf32>
    %cst_28 = arith.constant 1.000000e+00 : f32
    %47 = vector.broadcast %cst_28 : f32 to vector<8x32xf32>
    %48 = arith.addf %46, %47 : vector<8x32xf32>
    %49 = arith.mulf %45, %48 : vector<8x32xf32>
    %cst_29 = arith.constant 0.000000e+00 : f32
    %50 = vector.broadcast %cst_29 : f32 to vector<8x32xf32>
    %51 = arith.cmpf ogt, %40, %50 : vector<8x32xf32>
    %52 = arith.select %51, %40, %49 : vector<8x32xi1>, vector<8x32xf32>
    %c1_30 = arith.constant 1 : index
    %c0_31 = arith.constant 0 : index
    %c0_32 = arith.constant 0 : index
    %53 = vector.load %arg6[%c1_30, %c0_31, %c0_32] : memref<2x1x32xf32, #tpu.memory_space<vmem>>, vector<1x1x32xf32>
    %54 = vector.shape_cast %53 : vector<1x1x32xf32> to vector<1x32xf32>
    %55 = vector.broadcast %54 : vector<1x32xf32> to vector<8x32xf32>
    %56 = arith.mulf %52, %55 : vector<8x32xf32>
    %cst_33 = arith.constant dense<0.000000e+00> : vector<8xf32>
    %57 = vector.multi_reduction <add>, %56, %cst_33 [1] : vector<8x32xf32> to vector<8xf32>
    %58 = vector.shape_cast %57 : vector<8xf32> to vector<8x1xf32>
    %59 = tpu.concatenate %32, %58 in 1 : vector<8x1xf32>, vector<8x1xf32> -> vector<8x2xf32>
    %c0_34 = arith.constant 0 : index
    %c0_35 = arith.constant 0 : index
    %60 = vector.load %arg7[%c0_34, %c0_35] : memref<1x2xf32, #tpu.memory_space<vmem>>, vector<1x2xf32>
    %61 = vector.broadcast %60 : vector<1x2xf32> to vector<8x2xf32>
    %62 = arith.addf %59, %61 : vector<8x2xf32>
    %c0_36 = arith.constant 0 : index
    %c0_37 = arith.constant 0 : index
    %63 = vector.load %arg8[%c0_36, %c0_37] : memref<8x2xf32, #tpu.memory_space<vmem>>, vector<8x2xf32>
    tpu.vector_store %arg8[%c0_36, %c0_37], %62 {strides = array<i32>} : memref<8x2xf32, #tpu.memory_space<vmem>>, vector<8x2xf32>,
    return
  }
  func.func @transform_0(%arg0: i32) -> (i32, i32) {
    %c0_i32 = arith.constant 0 : i32
    %c0_i32_0 = arith.constant 0 : i32
    return %arg0, %c0_i32 : i32, i32
  }
  func.func @transform_1(%arg0: i32) -> (i32, i32) {
    %c0_i32 = arith.constant 0 : i32
    %c0_i32_0 = arith.constant 0 : i32
    %c0_i32_1 = arith.constant 0 : i32
    return %c0_i32, %c0_i32_0 : i32, i32
  }
  func.func @transform_2(%arg0: i32) -> (i32, i32) {
    %c0_i32 = arith.constant 0 : i32
    %c0_i32_0 = arith.constant 0 : i32
    %c0_i32_1 = arith.constant 0 : i32
    return %c0_i32, %c0_i32_0 : i32, i32
  }
  func.func @transform_3(%arg0: i32) -> (i32, i32, i32) {
    %c0_i32 = arith.constant 0 : i32
    %c0_i32_0 = arith.constant 0 : i32
    %c0_i32_1 = arith.constant 0 : i32
    %c0_i32_2 = arith.constant 0 : i32
    return %c0_i32, %c0_i32_0, %c0_i32_1 : i32, i32, i32
  }
  func.func @transform_4(%arg0: i32) -> (i32, i32, i32) {
    %c0_i32 = arith.constant 0 : i32
    %c0_i32_0 = arith.constant 0 : i32
    %c0_i32_1 = arith.constant 0 : i32
    %c0_i32_2 = arith.constant 0 : i32
    return %c0_i32, %c0_i32_0, %c0_i32_1 : i32, i32, i32
  }
  func.func @transform_5(%arg0: i32) -> (i32, i32, i32) {
    %c0_i32 = arith.constant 0 : i32
    %c0_i32_0 = arith.constant 0 : i32
    %c0_i32_1 = arith.constant 0 : i32
    %c0_i32_2 = arith.constant 0 : i32
    return %c0_i32, %c0_i32_0, %c0_i32_1 : i32, i32, i32
  }
  func.func @transform_6(%arg0: i32) -> (i32, i32) {
    %c0_i32 = arith.constant 0 : i32
    %c0_i32_0 = arith.constant 0 : i32
    %c0_i32_1 = arith.constant 0 : i32
    return %c0_i32, %c0_i32_0 : i32, i32
  }
  func.func @transform_7(%arg0: i32) -> (i32, i32) {
    %c0_i32 = arith.constant 0 : i32
    %c0_i32_0 = arith.constant 0 : i32
    return %arg0, %c0_i32 : i32, i32
  }
}

</mosaic_0001>

<bundles_post_ra>
// kernel: tpu_custom_call.1
= control target key start
LH: loop header
LB: loop body
LE: loop exit
PB: predicated region body
PF: predicated region fallthrough
CT: control target
= control target key end

     0   :  { %12 = vsyncpa [#allocation3], 0  ;;  %s655_s0 = inlined_call_operand.hbm [shape: f32[8,16], index: 0, kind: input, shape index: {}]   ;;  %s656_s1 = inlined_call_operand.hbm [shape: f32[16,64], index: 1, kind: input, shape index: {}]   ;;  %s657_s2 = inlined_call_operand.vmem [shape: f32[1,64], index: 2, kind: input, shape index: {}]   ;;  %s658_s3 = inlined_call_operand.hbm [shape: f32[2,32,32], index: 3, kind: input, shape index: {}]   ;;  %s659_s4 = inlined_call_operand.vmem [shape: f32[2,1,32], index: 4, kind: input, shape index: {}]   ;;  %s660_s5 = inlined_call_operand.vmem [shape: f32[2,1,32], index: 5, kind: input, shape index: {}]   ;;  %s661_s6 = inlined_call_operand.vmem [shape: f32[1,2], index: 6, kind: input, shape index: {}]   ;;  %s662_s7 = inlined_call_operand.vmem [shape: f32[8,2], index: 7, kind: output, shape index: {}]  }
   0x1   :  { %13 = vsyncpa [#allocation5], 0  ;;  %s539_s24 = smov [#allocation4]   ;;  %s469_s28 = scalar_lea.hbm %s656_s1, 256 }
   0x2   :  { %s29_s25 = sshll.u32 %s539_s24, 4  ;;  %p470_p0 = scmp.ne.s32.totalorder %s656_s1, %s469_s28  ;;  %s30_s25 = int_to_ptr.vmem [resolvable:$true] %s29_s25 }
   0x3   :  { %p473_p1 = scmp.lt.u32.totalorder %s469_s28, %s656_s1 }
   0x5   :  { %p475_p2 = pnand %p473_p1, %p470_p0 }
   0x7   :  { %478 = shalt.err (!%p475_p2)
}
   0x8   :  { %s479_s10 = scalar_lea.vmem %s30_s25, 256  ;;  %p484_p4 = scmp.lt.s32.totalorder %s30_s25, %s30_s25 }
   0x9   :  { %p480_p3 = scmp.ne.s32.totalorder %s30_s25, %s479_s10  ;;  %p485_p5 = scmp.lt.s32.totalorder %s479_s10, %s479_s10 }
   0xb   :  { %p486_p6 = por %p485_p5, %p484_p4 }
   0xd   :  { %p487_p7 = pnand %p486_p6, %p480_p3 }
   0xf   :  { %490 = shalt.err (!%p487_p7)
}
  0x10   :  { %s540_s11 = smov 128   ;;  %s541_s12 = smov 8  }
  0x11   :  { %35 = dma.hbm_to_vmem [thread:$0]  %s656_s1, 256, %s30_s25, [#allocation5], %s540_s11, %s540_s11, %s541_s12  }
  0x12   :  { %s542_s15 = smov [#allocation2]   ;;  %s543_s17 = smov [#allocation6]  }
  0x13   :  { %s20_s16 = sshll.u32 %s542_s15, 4  ;;  %s43_s18 = sshll.u32 %s543_s17, 4  ;;  %s21_s16 = int_to_ptr.vmem [resolvable:$true] %s20_s16  ;;  %s44_s18 = int_to_ptr.vmem [resolvable:$true] %s43_s18 }
  0x14   :  { %s491_s21 = scalar_lea.hbm %s655_s0, 128 }
  0x15   :  { %p492_p8 = scmp.ne.s32.totalorder %s655_s0, %s491_s21  ;;  %p495_p9 = scmp.lt.u32.totalorder %s491_s21, %s655_s0 }
  0x17   :  { %p497_p10 = pnand %p495_p9, %p492_p8 }
  0x19   :  { %500 = shalt.err (!%p497_p10)
}
  0x1a   :  { %s501_s1 = scalar_lea.vmem %s21_s16, 128  ;;  %p506_p12 = scmp.lt.s32.totalorder %s21_s16, %s21_s16 }
  0x1b   :  { %p502_p11 = scmp.ne.s32.totalorder %s21_s16, %s501_s1  ;;  %p507_p13 = scmp.lt.s32.totalorder %s501_s1, %s501_s1 }
  0x1d   :  { %p508_p0 = por %p507_p13, %p506_p12 }
  0x1f   :  { %p509_p1 = pnand %p508_p0, %p502_p11 }
  0x21   :  { %512 = shalt.err (!%p509_p1)
}
  0x22   :  { %23 = dma.hbm_to_vmem [thread:$0]  %s655_s0, 128, %s21_s16, [#allocation3]  }
  0x23   :  { %s513_s30 = scalar_lea.hbm %s658_s3, 1024 }
  0x24   :  { %p514_p2 = scmp.ne.s32.totalorder %s658_s3, %s513_s30  ;;  %p517_p3 = scmp.lt.u32.totalorder %s513_s30, %s658_s3 }
  0x26   :  { %p519_p4 = pnand %p517_p3, %p514_p2 }
  0x28   :  { %522 = shalt.err (!%p519_p4)
}
  0x29   :  { %s523_s14 = scalar_lea.vmem %s44_s18, 1024  ;;  %p528_p6 = scmp.lt.s32.totalorder %s44_s18, %s44_s18 }
  0x2a   :  { %p524_p5 = scmp.ne.s32.totalorder %s44_s18, %s523_s14  ;;  %p529_p7 = scmp.lt.s32.totalorder %s523_s14, %s523_s14 }
  0x2c   :  { %p530_p8 = por %p529_p7, %p528_p6 }
  0x2e   :  { %p531_p9 = pnand %p530_p8, %p524_p5 }
  0x30   :  { %534 = shalt.err (!%p531_p9)
}
  0x31   :  { %49 = dma.hbm_to_vmem [thread:$0]  %s658_s3, 1024, %s44_s18, [#allocation5], %s540_s11, %s540_s11, %s541_s12  }
  0x32   :  { %535 = dma.done.wait [#allocation3], 128  }
  0x33   :  { %536 = vsyncadd [#allocation3], 4294967168 }
  0x34   :  { %537 = dma.done.wait [#allocation5], 1280  }
  0x35   :  { %538 = vsyncadd [#allocation5], 4294966016  ;;  %v544_v0 = vmov 0.0|0.0   ;;  %vm545_vm0 = vmmov 0   ;;  %v546_v1 = vmov 0.0   ;;  %v66_v2 = vld [vmem:[#allocation4] sm:$0xff] }
  0x36   :  { %435 = vmatprep.subr.bf16.mxu0 %v544_v0  ;;  %410 = vmatprep.mubr.msk.f32.mxu0 %vm545_vm0, %v546_v1  ;;  %v67_v3 = vld [vmem:[#allocation4 + $0x8] sm:$0xff]  ;;  %v65_v5 = vld [vmem:[#allocation2] sm:$0xff]  ;;  %vm75_vm1 = vcmask 130048   ;;  %v151_v6 = vld [vmem:[#allocation6] sm:$0xff]  ;;  %vm162_vm2 = vcmask 261120   ;;  %s547_s12 = smov 96  }
  0x37   :  { %438 = vmatprep.subr.bf16.mxu1 %v544_v0  ;;  %421 = vmatprep.mubr.msk.f32.mxu1 %vm545_vm0, %v546_v1  ;;  %v436_v4 = vpack.c.bf16 %v67_v3, %v66_v2  ;;  %v152_v7 = vld [vmem:[#allocation6 + $0x8] sm:$0xff]  ;;  %v153_v8 = vld [vmem:[#allocation6 + $0x10] sm:$0xff]  ;;  %v154_v10 = vld [vmem:[#allocation6 + $0x18] sm:$0xff]  ;;  %vm364_vm5 = vcmask 7168   ;;  %vm374_vm6 = vcmask 15360  }
  0x38   :  { %v439_v9 = vpack.c.bf16 %v152_v7, %v151_v6  ;;  %v442_v11 = vpack.c.bf16 %v154_v10, %v153_v8  ;;  %v257_v12 = vld [vmem:[#allocation6 + $0x20] sm:$0xff]  ;;  %v258_v13 = vld [vmem:[#allocation6 + $0x28] sm:$0xff]  ;;  %v259_v14 = vld [vmem:[#allocation6 + $0x30] sm:$0xff] }
  0x39   :  { %437 = vmatpush3.bf16.msra.mxu0 %v436_v4  ;;  %v445_v15 = vpack.c.bf16 %v258_v13, %v257_v12  ;;  %v260_v16 = vld [vmem:[#allocation6 + $0x38] sm:$0xff]  ;;  %v382_v18 = vld [vmem:[%s657_s2] ss:$0 sm:$0xff]  ;;  %v388_v40 = vld [vmem:[%s659_s4 + $0x1] ss:$0 sm:$0xff] }
  0x3a   :  { %444 = vmatprep.subr.bf16.mxu0 %v544_v0  ;;  %440 = vmatpush3.bf16.msra.mxu1 %v439_v9  ;;  %v448_v17 = vpack.c.bf16 %v260_v16, %v259_v14  ;;  %v384_v25 = vld [vmem:[%s659_s4] ss:$0 sm:$0xff]  ;;  %v391_v51 = vld [vmem:[%s660_s5 + $0x1] ss:$0 sm:$0xff] }
  0x3b   :  { %441 = vmatprep.subr.bf16.mxu1 %v544_v0  ;;  %v386_v36 = vld [vmem:[%s660_s5] ss:$0 sm:$0xff] }
  0x3c   :  { %411 = vmatmul.mubr.msk.f32.vlgmr.msra.gmra.mrb[0].mxu0 %vm75_vm1, %v65_v5  ;;  %v392_v55 = vld [vmem:[%s661_s6] ss:$0 sm:$0xff] }
  0x3d   :  { %432 = vmatprep.mubr.msk.f32.mxu0 %vm545_vm0, %v546_v1  ;;  %446 = vmatpush3.bf16.msra.mxu0 %v445_v15 }
  0x3e   :  { %443 = vmatpush3.bf16.msra.mxu1 %v442_v11  ;;  %447 = vmatprep.subr.bf16.mxu0 %v544_v0 }
  0x41   :  { %449 = vmatpush3.bf16.msra.mxu0 %v448_v17 }
 0x10f   :  { %v145_v19 = vpop.f32.mrb[0].mxu0 }
 0x110   :  { %v146_v20 = vadd.f32 %v382_v18, %v145_v19  ;;  %v412_v21 = vpop.f32.mrb[1].mxu0 }
 0x112   :  { %v149_v22 = vmul.f32 1.442695, %v146_v20 }
 0x114   :  { %459 = vpow2.f32 %v149_v22 }
 0x11e   :  { %v460_v23 = vpop.eup %459 }
 0x11f   :  { %269 = vrot.lane.b32.xlu0 %v460_v23, %s547_s12  ;;  %422 = vmatmul.mubr.msk.f32.vlgmr.msra.gmra.mrb[0].mxu1 %vm162_vm2, %v460_v23 }
 0x191   :  { %v270_v24 = vpop.permute.xlu0 %269 }
 0x192   :  { %433 = vmatmul.mubr.msk.f32.vlgmr.msra.gmra.mrb[2].mxu0 %vm162_vm2, %v270_v24 }
 0x1f2   :  { %v232_v26 = vpop.f32.mrb[0].mxu1 }
 0x1f3   :  { %v233_v27 = vadd.f32 %v384_v25, %v232_v26  ;;  %v423_v28 = vpop.f32.mrb[1].mxu1 }
 0x1f5   :  { %v236_v29 = vmin.f32 %v233_v27, 0.0  ;;  %vm243_vm3 = vcmp.gt.f32.partialorder %v233_v27, 0.0 }
 0x1f7   :  { %v239_v30 = vmul.f32 1.442695, %v236_v29  ;;  %v237_v31 = vmul.f32 0.5, %v236_v29 }
 0x1f9   :  { %461 = vpow2.f32 %v239_v30 }
 0x1fa   :  { %463 = vtanh.f32 %v237_v31 }
 0x203   :  { %v462_v32 = vpop.eup %461 }
 0x204   :  { %v241_v33 = vadd.f32 1.0, %v462_v32  ;;  %v464_v34 = vpop.eup %463 }
 0x206   :  { %v242_v35 = vmul.f32 %v464_v34, %v241_v33 }
 0x208   :  { %v244_v37 = vsel %vm243_vm3, %v233_v27, %v242_v35 }
 0x209   :  { %v252_v38 = vmul.f32 %v386_v36, %v244_v37 }
 0x20b   :  { %v253_v39 = vsel %vm162_vm2, %v252_v38, 0.0 }
 0x20c   :  { %254 = vadd.xlane.f32.xlu0 %v253_v39 }
 0x265   :  { %v339_v41 = vpop.f32.mrb[2].mxu0 }
 0x266   :  { %v340_v42 = vadd.f32 %v388_v40, %v339_v41  ;;  %v434_v43 = vpop.f32.mrb[3].mxu0 }
 0x268   :  { %v343_v44 = vmin.f32 %v340_v42, 0.0  ;;  %vm350_vm4 = vcmp.gt.f32.partialorder %v340_v42, 0.0 }
 0x26a   :  { %v346_v45 = vmul.f32 1.442695, %v343_v44  ;;  %v344_v46 = vmul.f32 0.5, %v343_v44 }
 0x26c   :  { %465 = vpow2.f32 %v346_v45 }
 0x26d   :  { %467 = vtanh.f32 %v344_v46 }
 0x276   :  { %v466_v47 = vpop.eup %465 }
 0x277   :  { %v348_v48 = vadd.f32 1.0, %v466_v47  ;;  %v468_v49 = vpop.eup %467 }
 0x279   :  { %v349_v50 = vmul.f32 %v468_v49, %v348_v48 }
 0x27b   :  { %v351_v52 = vsel %vm350_vm4, %v340_v42, %v349_v50 }
 0x27c   :  { %v360_v53 = vmul.f32 %v391_v51, %v351_v52 }
 0x27e   :  { %v361_v54 = vsel %vm162_vm2, %v360_v53, 0.0 }
 0x27f   :  { %362 = vadd.xlane.f32.xlu1 %v361_v54 }
 0x299   :  { %v255_v56 = vpop.xlane.xlu0 %254 }
 0x30c   :  { %v363_v57 = vpop.xlane.xlu1 %362 }
 0x30d   :  { %v365_v58 = vsel %vm364_vm5, %v255_v56, %v363_v57 }
 0x30e   :  { %v373_v59 = vadd.f32 %v392_v55, %v365_v58 }
 0x310   :  { %375 = vst.msk [vmem:[%s662_s7] sm:$0xff] %vm374_vm6, %v373_v59 }
 0x311   :  { %380 = vsyncpa [#allocation3], 1 }
 0x312   :  { %381 = vsyncpa [#allocation5], 1 }

</bundles_post_ra>
